<compile_context>
chip_gen: v7x
topology: tpu7x:2x2x1
jax: 0.10.0
libtpu: 0.0.40
codegen_flags: <defaults>
</compile_context>

<pallas_src>
import jax
import jax.numpy as jnp
from jax.experimental import pallas as pl
from jax.experimental.pallas import tpu as pltpu


def dummy_model_kernel(xt_ref, w_ref, b_ref, ot_ref):
    # xt_ref: (16, TB) bf16   w_ref: (2, 16, 16) bf16   b_ref: (2, 16, 1) f32
    xt = xt_ref[...]                                     # (16, TB) bf16 (no upcast)
    w1 = w_ref[0]                                        # (16, 16) bf16, (out, in)
    w2 = w_ref[1]
    b1 = b_ref[0]                                        # (16, 1) f32 -> lane broadcast
    b2 = b_ref[1]

    # bf16 x bf16 MXU matmuls, f32 accumulation / bias / ReLU on the VPU.
    h = jnp.dot(w1, xt, preferred_element_type=jnp.float32) + b1    # (16, TB) f32
    h = jnp.maximum(h, 0.0).astype(jnp.bfloat16)                    # ReLU, bf16 for MXU
    y = jnp.dot(w2, h, preferred_element_type=jnp.float32) + b2     # (16, TB) f32
    ot_ref[...] = y.astype(ot_ref.dtype)                            # store in caller dtype


def _round_up(n, m):
    return ((n + m - 1) // m) * m


def _choose_tile(B, tb):
    """Lane-aligned batch tile, capped at `tb`; prefer an even tile count (>=2)
    when B spans more than one tile so v7x's two TensorCores both get work."""
    tb_eff = min(tb, _round_up(B, 128))
    n_tiles = -(-B // tb_eff)
    if n_tiles > 1 and n_tiles % 2 == 1:
        tb_eff = _round_up(-(-B // (n_tiles + 1)), 128)
    return tb_eff


def dummy_model_forward(x, w1, b1, w2, b2, *, tb=32768):
    """x: (B, 16); w1/w2: (16, 16) PyTorch (out, in) layout; b1/b2: (16,)."""
    B, D = x.shape
    assert D == 16 and w1.shape == (16, 16) and w2.shape == (16, 16)

    out_dtype = x.dtype
    out_itemsize = jnp.dtype(out_dtype).itemsize

    # Interface-boundary layout plumbing only: one convert+transpose pass in,
    # one transpose pass out.  No pad, no post-hoc astype.
    xt = x.astype(jnp.bfloat16).T                                  # (16, B) bf16
    w12 = jnp.stack([w1, w2]).astype(jnp.bfloat16)                 # (2, 16, 16) bf16
    b12 = jnp.stack([b1.reshape(16, 1), b2.reshape(16, 1)]).astype(jnp.float32)  # (2,16,1)

    tb_eff = _choose_tile(B, tb)
    num_tiles = -(-B // tb_eff)          # ragged last tile handled by Pallas masking
    grid = (num_tiles,)

    # Per-tile VMEM: double-buffered bf16 in + out-dtype out, plus f32 h/y temps,
    # plus the small resident weights.  Set the scoped limit with 2x headroom,
    # floored at 32 MiB (>= every generation's default) and capped below v7x's
    # 64 MiB physical VMEM.
    per_col = 2 * (16 * 2 + 16 * out_itemsize) + 2 * 16 * 4
    need = per_col * tb_eff + 4 * (2 * 16 * 16 * 2 + 2 * 16 * 4)
    vmem_limit = int(min(max(2 * need, 32 << 20), 48 << 20))

    cost = pl.CostEstimate(
        flops=2 * 2 * B * 16 * 16,                                  # two 16x16 matmuls / row
        transcendentals=0,
        bytes_accessed=B * 16 * 2 + B * 16 * out_itemsize
        + 2 * 16 * 16 * 2 + 2 * 16 * 4,
    )

    out_t = pl.pallas_call(
        dummy_model_kernel,
        out_shape=jax.ShapeDtypeStruct((16, B), out_dtype),
        grid_spec=pltpu.PrefetchScalarGridSpec(
            num_scalar_prefetch=0,
            grid=grid,
            in_specs=[
                pl.BlockSpec((16, tb_eff), lambda i: (0, i)),      # x^T tile (streamed)
                pl.BlockSpec((2, 16, 16), lambda i: (0, 0, 0)),    # packed weights (resident)
                pl.BlockSpec((2, 16, 1), lambda i: (0, 0, 0)),     # packed biases (resident)
            ],
            out_specs=pl.BlockSpec((16, tb_eff), lambda i: (0, i)),  # y^T tile (streamed)
        ),
        compiler_params=pltpu.CompilerParams(
            dimension_semantics=("parallel",),
            vmem_limit_bytes=vmem_limit,
        ),
        cost_estimate=cost,
    )(xt, w12, b12)

    # Back to the module's (B, 16) interface (single transpose; dtype already correct).
    return out_t.T


def _init_linear_params(key, in_features, out_features):
    """Deterministic init matching PyTorch nn.Linear default (Kaiming-uniform-ish bound)."""
    k_w, k_b = jax.random.split(key)
    bound = 1.0 / (in_features ** 0.5)
    w = jax.random.uniform(k_w, (out_features, in_features), jnp.float32,
                           minval=-bound, maxval=bound)
    b = jax.random.uniform(k_b, (out_features,), jnp.float32,
                           minval=-bound, maxval=bound)
    return w, b


if __name__ == "__main__":
    key = jax.random.PRNGKey(0)
    k_x, k_l1, k_l2 = jax.random.split(key, 3)

    batch = 8
    x = jax.random.normal(k_x, (batch, 16), jnp.float32)

    w1, b1 = _init_linear_params(k_l1, 16, 16)   # nn.Linear(16, 16) weight: (out, in)
    w2, b2 = _init_linear_params(k_l2, 16, 16)

    out = dummy_model_forward(x, w1, b1, w2, b2)
    out = jax.block_until_ready(out)

    # Pure-JAX reference of the same forward semantics (f32).
    ref = jnp.maximum(x @ w1.T + b1, 0.0) @ w2.T + b2
    assert out.shape == (batch, 16)
    assert out.dtype == x.dtype
    # bf16 MXU operands -> loosened tolerance vs the f32 reference.
    assert jnp.allclose(out, ref, atol=3e-2, rtol=3e-2), "mismatch vs reference"

    print("KERNEL_OK")
</pallas_src>

<mosaic_0001>
module attributes {stable_mosaic.version = 11 : i64} {
  func.func @dummy_model_kernel(%arg0: i32, %arg1: memref<16x128xbf16, #tpu.memory_space<vmem>>, %arg2: memref<2x16x16xbf16, #tpu.memory_space<vmem>>, %arg3: memref<2x16x1xf32, #tpu.memory_space<vmem>>, %arg4: memref<16x128xf32, #tpu.memory_space<vmem>>) attributes {dimension_semantics = [#tpu.dimension_semantics<parallel>], iteration_bounds = array<i64: 1>, scalar_prefetch = 0 : i64, scratch_operands = 0 : i64, tpu.core_type = #tpu.core_type<tc>, window_params = [{transform_indices = @transform_0, window_bounds = array<i64: 16, 128>}, {pipeline_mode = #tpu.pipeline_mode<synchronous>, transform_indices = @transform_1, window_bounds = array<i64: 2, 16, 16>}, {pipeline_mode = #tpu.pipeline_mode<synchronous>, transform_indices = @transform_2, window_bounds = array<i64: 2, 16, 1>}, {transform_indices = @transform_3, window_bounds = array<i64: 16, 128>}]} {
    %c0 = arith.constant 0 : index
    %c0_0 = arith.constant 0 : index
    %0 = vector.load %arg1[%c0, %c0_0] : memref<16x128xbf16, #tpu.memory_space<vmem>>, vector<16x128xbf16>
    %c0_1 = arith.constant 0 : index
    %c0_2 = arith.constant 0 : index
    %c0_3 = arith.constant 0 : index
    %1 = vector.load %arg2[%c0_1, %c0_2, %c0_3] : memref<2x16x16xbf16, #tpu.memory_space<vmem>>, vector<1x16x16xbf16>
    %2 = vector.shape_cast %1 : vector<1x16x16xbf16> to vector<16x16xbf16>
    %c1 = arith.constant 1 : index
    %c0_4 = arith.constant 0 : index
    %c0_5 = arith.constant 0 : index
    %3 = vector.load %arg2[%c1, %c0_4, %c0_5] : memref<2x16x16xbf16, #tpu.memory_space<vmem>>, vector<1x16x16xbf16>
    %4 = vector.shape_cast %3 : vector<1x16x16xbf16> to vector<16x16xbf16>
    %c0_6 = arith.constant 0 : index
    %c0_7 = arith.constant 0 : index
    %c0_8 = arith.constant 0 : index
    %5 = vector.load %arg3[%c0_6, %c0_7, %c0_8] : memref<2x16x1xf32, #tpu.memory_space<vmem>>, vector<1x16x1xf32>
    %6 = vector.shape_cast %5 : vector<1x16x1xf32> to vector<16x1xf32>
    %c1_9 = arith.constant 1 : index
    %c0_10 = arith.constant 0 : index
    %c0_11 = arith.constant 0 : index
    %7 = vector.load %arg3[%c1_9, %c0_10, %c0_11] : memref<2x16x1xf32, #tpu.memory_space<vmem>>, vector<1x16x1xf32>
    %8 = vector.shape_cast %7 : vector<1x16x1xf32> to vector<16x1xf32>
    %cst = arith.constant dense<0.000000e+00> : vector<16x128xf32>
    %9 = tpu.matmul %2, %0, %cst {dimension_numbers = #tpu.dot_dimension_numbers<[1], [0], [0], [1], [0, 0, 1, 1], [], []>} : vector<16x16xbf16>, vector<16x128xbf16>, vector<16x128xf32> -> vector<16x128xf32>
    %10 = vector.broadcast %6 : vector<16x1xf32> to vector<16x128xf32>
    %11 = arith.addf %9, %10 : vector<16x128xf32>
    %cst_12 = arith.constant 0.000000e+00 : f32
    %12 = vector.broadcast %cst_12 : f32 to vector<16x128xf32>
    %13 = arith.maximumf %11, %12 : vector<16x128xf32>
    %14 = arith.truncf %13 : vector<16x128xf32> to vector<16x128xbf16>
    %cst_13 = arith.constant dense<0.000000e+00> : vector<16x128xf32>
    %15 = tpu.matmul %4, %14, %cst_13 {dimension_numbers = #tpu.dot_dimension_numbers<[1], [0], [0], [1], [0, 0, 1, 1], [], []>} : vector<16x16xbf16>, vector<16x128xbf16>, vector<16x128xf32> -> vector<16x128xf32>
    %16 = vector.broadcast %8 : vector<16x1xf32> to vector<16x128xf32>
    %17 = arith.addf %15, %16 : vector<16x128xf32>
    %c0_14 = arith.constant 0 : index
    %c0_15 = arith.constant 0 : index
    %18 = vector.load %arg4[%c0_14, %c0_15] : memref<16x128xf32, #tpu.memory_space<vmem>>, vector<16x128xf32>
    tpu.vector_store %arg4[%c0_14, %c0_15], %17 {strides = array<i32>} : memref<16x128xf32, #tpu.memory_space<vmem>>, vector<16x128xf32>,
    return
  }
  func.func @transform_0(%arg0: i32) -> (i32, i32) {
    %c0_i32 = arith.constant 0 : i32
    %c0_i32_0 = arith.constant 0 : i32
    return %c0_i32, %arg0 : i32, i32
  }
  func.func @transform_1(%arg0: i32) -> (i32, i32, i32) {
    %c0_i32 = arith.constant 0 : i32
    %c0_i32_0 = arith.constant 0 : i32
    %c0_i32_1 = arith.constant 0 : i32
    %c0_i32_2 = arith.constant 0 : i32
    return %c0_i32, %c0_i32_0, %c0_i32_1 : i32, i32, i32
  }
  func.func @transform_2(%arg0: i32) -> (i32, i32, i32) {
    %c0_i32 = arith.constant 0 : i32
    %c0_i32_0 = arith.constant 0 : i32
    %c0_i32_1 = arith.constant 0 : i32
    %c0_i32_2 = arith.constant 0 : i32
    return %c0_i32, %c0_i32_0, %c0_i32_1 : i32, i32, i32
  }
  func.func @transform_3(%arg0: i32) -> (i32, i32) {
    %c0_i32 = arith.constant 0 : i32
    %c0_i32_0 = arith.constant 0 : i32
    return %c0_i32, %arg0 : i32, i32
  }
}

</mosaic_0001>

<bundles_post_ra>
// kernel: tpu_custom_call.1
= control target key start
LH: loop header
LB: loop body
LE: loop exit
PB: predicated region body
PF: predicated region fallthrough
CT: control target
= control target key end

     0   :  { %v194_v0 = vmov 0.0   ;;  %vm195_vm0 = vmmov 0   ;;  %v196_v3 = vmov 0   ;;  %vm48_vm1 = vcmask 130048   ;;  %s246_s0 = inlined_call_operand.vmem [shape: bf16[16,8], index: 0, kind: input, shape index: {}]   ;;  %s247_s1 = inlined_call_operand.vmem [shape: bf16[2,16,16], index: 1, kind: input, shape index: {}]   ;;  %s248_s2 = inlined_call_operand.vmem [shape: f32[2,16,1], index: 2, kind: input, shape index: {}]   ;;  %s249_s3 = inlined_call_operand.vmem [shape: f32[16,8], index: 3, kind: output, shape index: {}]  }
   0x1   :  { %174 = vmatprep.subr.bf16.mxu0 %v194_v0  ;;  %v191_v1 = vld [vmem:[%s246_s0] sm:$0xff]   ;;  %176 = vmatprep.mubr.msk.bf16.mxu0 %vm195_vm0, %v194_v0  ;;  %v23_v5 = vld [vmem:[%s248_s2 + $0x8] sm:$0xff]  ;;  %v163_v6 = vld [vmem:[%s248_s2 + $0x10] sm:$0xff] }
   0x2   :  { %v192_v2 = vld [vmem:[%s247_s1] sm:$0xff]   ;;  %189 = vset.pattern.permute.xlu0 %v196_v3  ;;  %180 = vmatprep.subr.bf16.mxu1 %v194_v0  ;;  %v164_v7 = vld [vmem:[%s248_s2 + $0x18] sm:$0xff]  ;;  %v193_v19 = vld [vmem:[%s247_s1 + $0x8] sm:$0xff]  }
   0x3   :  { %175 = vmatpush3.bf16.msra.mxu0 %v191_v1  ;;  %v22_v4 = vld [vmem:[%s248_s2] sm:$0xff]  ;;  %182 = vmatprep.mubr.msk.bf16.mxu1 %vm195_vm0, %v194_v0 }
   0x4   :  { %29 = vperm.xlu0 %189, %v22_v4   ;;  %190 = vset.pattern.permute.xlu1 %v196_v3 }
   0x5   :  { %98 = vperm.xlu1 %190, %v163_v6  }
   0x6   :  { %177 = vmatmul.mubr.msk.bf16.vlgmr.msra.gmra.mrb[0].mxu0 %vm48_vm1, %v192_v2 }
   0x8   :  { %34 = vperm.xlu0 %189, %v23_v5  }
   0x9   :  { %103 = vperm.xlu1 %190, %v164_v7  }
  0x83   :  { %v30_v8 = vpop.permute.xlu0 %29 }
  0x84   :  { %v99_v20 = vpop.permute.xlu1 %98 }
  0x87   :  { %v35_v12 = vpop.permute.xlu0 %34 }
  0x88   :  { %v104_v24 = vpop.permute.xlu1 %103 }
  0xd9   :  { %v86_v9 = vpop.f32.mrb[0].mxu0 }
  0xda   :  { %v87_v10 = vadd.f32 %v86_v9, %v30_v8  ;;  %v178_v11 = vpop.f32.mrb[1].mxu0 }
  0xdb   :  { %v89_v13 = vpop.f32.mrb[2].mxu0 }
  0xdc   :  { %v90_v14 = vadd.f32 %v89_v13, %v35_v12  ;;  %v179_v15 = vpop.f32.mrb[3].mxu0  ;;  %v93_v16 = vmax.f32 %v87_v10, 0.0 }
  0xde   :  { %v94_v17 = vmax.f32 %v90_v14, 0.0 }
  0xe0   :  { %v95_v18 = vpack.c.bf16 %v94_v17, %v93_v16 }
  0xe2   :  { %181 = vmatpush3.bf16.msra.mxu1 %v95_v18 }
  0xe5   :  { %183 = vmatmul.mubr.msk.bf16.vlgmr.msra.gmra.mrb[0].mxu1 %vm48_vm1, %v193_v19 }
 0x1b8   :  { %v148_v21 = vpop.f32.mrb[0].mxu1 }
 0x1b9   :  { %v149_v22 = vadd.f32 %v148_v21, %v99_v20  ;;  %v184_v23 = vpop.f32.mrb[1].mxu1 }
 0x1ba   :  { %v151_v25 = vpop.f32.mrb[2].mxu1 }
 0x1bb   :  { %155 = vst [vmem:[%s249_s3] sm:$0xff] %v149_v22  ;;  %v152_v26 = vadd.f32 %v151_v25, %v104_v24  ;;  %v185_v27 = vpop.f32.mrb[3].mxu1 }
 0x1bd   :  { %156 = vst [vmem:[%s249_s3 + $0x8] sm:$0xff] %v152_v26 }

</bundles_post_ra>
